<compile_context>
chip_gen: v7x
topology: tpu7x:2x2x1
jax: 0.10.0
libtpu: 0.0.40
codegen_flags: <defaults>
</compile_context>

<pallas_src>
import jax
import jax.numpy as jnp
from jax.experimental import pallas as pl
from jax.experimental.pallas import tpu as pltpu


def _round_up(x, m):
    return ((x + m - 1) // m) * m


def _tensorcores_per_chip():
    """Best-effort TC count (v7x has 2); harmless fallback to 1."""
    try:
        d = jax.devices()[0]
        kind = str(getattr(d, "device_kind", "")).lower()
        if "v7" in kind:
            return 2
        nc = getattr(d, "num_cores", None)
        if nc:
            return int(nc)
    except Exception:
        pass
    return 1


def _choose_tiling(B, tile_b, min_tiles):
    """Pick (TB, n_tiles): balanced tiles, sublane (8) aligned, >= min_tiles."""
    tile_b = max(8, _round_up(tile_b, 8))
    n_tiles = max(1, min_tiles, pl.cdiv(B, tile_b))
    if n_tiles == 1:
        return _round_up(B, 8), 1
    TB = _round_up(pl.cdiv(B, n_tiles), 8)
    n_tiles = max(min_tiles, pl.cdiv(B, TB))
    return TB, n_tiles


def qnet_kernel(x_ref, w1_ref, b1_ref, w2_ref, b2_ref, w3r_ref, b3_ref, o_ref):
    prec = jax.lax.Precision.HIGHEST  # explicit f32 matmul numerics (no silent bf16)

    # Layer 1: single matmul over the fused (S+A) feature axis.
    h1 = jnp.dot(x_ref[...], w1_ref[...],
                 preferred_element_type=jnp.float32, precision=prec) + b1_ref[...]
    h1 = jnp.maximum(h1, 0.0)                                        # (TB, H1)

    # Layer 2.
    h2 = jnp.dot(h1, w2_ref[...],
                 preferred_element_type=jnp.float32, precision=prec) + b2_ref[...]
    h2 = jnp.maximum(h2, 0.0)                                        # (TB, H2)

    # Layer 3 (out_features == 1): keep it off the MXU — VPU multiply against the
    # broadcast (1, H2) weight row + XLU lane reduce. Output block is a tiny
    # (TB, 1) column (TB*4 bytes/step).
    q = jnp.sum(h2 * w3r_ref[...], axis=-1, keepdims=True) + b3_ref[...]
    o_ref[...] = q.astype(o_ref.dtype)                               # (TB, 1)


def qnet_forward(s, a_onehot, params, *, tile_b=2048, min_tiles=None):
    """QNet forward. s: (B, S), a_onehot: (B, A) -> (B,)."""
    w1, b1, w2, b2, w3, b3 = params
    B, S = s.shape
    A = a_onehot.shape[1]
    H1 = w1.shape[1]
    H2 = w2.shape[1]

    if min_tiles is None:
        # Keep >= 2 balanced tiles on v7x so the "parallel" grid axis feeds both
        # TensorCores; on 1-TC chips avoid the extra grid-step overhead.
        min_tiles = _tensorcores_per_chip()

    # Fuse the concat at the JAX boundary: one (B, S+A) operand, one DMA stream,
    # one layer-1 matmul inside the kernel.
    x = jnp.concatenate([s, a_onehot], axis=1).astype(jnp.float32)
    w3r = w3.T                                   # (1, H2) row for the VPU epilogue

    TB, n_tiles = _choose_tiling(B, tile_b, min_tiles)
    B_pad = TB * n_tiles
    if B_pad != B:
        x = jnp.pad(x, ((0, B_pad - B), (0, 0)))

    # Constant block index -> DMA'd once, stays VMEM-resident across grid steps.
    resident = lambda arr: pl.BlockSpec(arr.shape, lambda i: (0, 0))

    flops = 2 * B_pad * ((S + A) * H1 + H1 * H2 + H2)
    bytes_accessed = 4 * (B_pad * (S + A + 1)
                          + w1.size + b1.size + w2.size + b2.size
                          + w3.size + b3.size)

    out = pl.pallas_call(
        qnet_kernel,
        out_shape=jax.ShapeDtypeStruct((B_pad, 1), jnp.float32),
        grid=(n_tiles,),
        in_specs=[
            pl.BlockSpec((TB, S + A), lambda i: (i, 0)),   # x tile (pipelined)
            resident(w1), resident(b1),
            resident(w2), resident(b2),
            resident(w3r), resident(b3),
        ],
        out_specs=pl.BlockSpec((TB, 1), lambda i: (i, 0)),
        compiler_params=pltpu.CompilerParams(
            dimension_semantics=("parallel",)),            # batch tiles across TCs
        cost_estimate=pl.CostEstimate(flops=flops, transcendentals=0,
                                      bytes_accessed=bytes_accessed),
    )(x, w1, b1, w2, b2, w3r, b3)

    return out[:B, 0]                                      # squeeze(-1) + drop padding


def init_qnet_params(key, state_dim, action_dim, hidden=(128, 128)):
    """Deterministic init mimicking nn.Linear's uniform(-1/sqrt(fan_in), +)."""
    dims = [state_dim + action_dim] + list(hidden) + [1]
    params = []
    for i in range(len(dims) - 1):
        fan_in, fan_out = dims[i], dims[i + 1]
        key, kw, kb = jax.random.split(key, 3)
        bound = 1.0 / jnp.sqrt(jnp.float32(fan_in))
        # stored as (in, out) so the kernel computes x @ W
        w = jax.random.uniform(kw, (fan_in, fan_out), jnp.float32, -bound, bound)
        b = jax.random.uniform(kb, (1, fan_out), jnp.float32, -bound, bound)
        params += [w, b]
    return tuple(params)


def qnet_reference(s, a_onehot, params):
    """Pure-JAX reference (same explicit f32 matmul precision)."""
    w1, b1, w2, b2, w3, b3 = params
    prec = jax.lax.Precision.HIGHEST
    x = jnp.concatenate([s, a_onehot], axis=1)
    h1 = jnp.maximum(jnp.dot(x, w1, precision=prec) + b1, 0.0)
    h2 = jnp.maximum(jnp.dot(h1, w2, precision=prec) + b2, 0.0)
    return (jnp.dot(h2, w3, precision=prec) + b3)[:, 0]


if __name__ == "__main__":
    key = jax.random.PRNGKey(0)
    state_dim, action_dim = 8, 4

    kp, ks, ka, ks2, ka2 = jax.random.split(key, 5)
    params = init_qnet_params(kp, state_dim, action_dim)

    # Small acting-time batch.
    batch = 2
    s = jax.random.normal(ks, (batch, state_dim), jnp.float32)
    a_idx = jax.random.randint(ka, (batch,), 0, action_dim)
    a_onehot = jax.nn.one_hot(a_idx, action_dim, dtype=jnp.float32)

    q = jax.block_until_ready(qnet_forward(s, a_onehot, params))
    q_ref = qnet_reference(s, a_onehot, params)
    assert q.shape == (batch,), q.shape
    assert jnp.allclose(q, q_ref, atol=1e-4, rtol=1e-4), (q, q_ref)

    # Training-style batch: default tiling (single balanced tile on 1-TC chips,
    # two on v7x).
    batch2 = 300
    s2 = jax.random.normal(ks2, (batch2, state_dim), jnp.float32)
    a_idx2 = jax.random.randint(ka2, (batch2,), 0, action_dim)
    a_onehot2 = jax.nn.one_hot(a_idx2, action_dim, dtype=jnp.float32)

    q2 = jax.block_until_ready(qnet_forward(s2, a_onehot2, params))
    q2_ref = qnet_reference(s2, a_onehot2, params)
    assert q2.shape == (batch2,), q2.shape
    assert jnp.allclose(q2, q2_ref, atol=1e-4, rtol=1e-4), (q2, q2_ref)

    # Force the multi-tile grid / padding / balancing path regardless of chip.
    q3 = jax.block_until_ready(
        qnet_forward(s2, a_onehot2, params, tile_b=128, min_tiles=2))
    assert q3.shape == (batch2,), q3.shape
    assert jnp.allclose(q3, q2_ref, atol=1e-4, rtol=1e-4), (q3, q2_ref)

    print("KERNEL_OK")
</pallas_src>

<mosaic_0001>
module attributes {stable_mosaic.version = 11 : i64} {
  func.func @qnet_kernel(%arg0: i32, %arg1: memref<8x12xf32, #tpu.memory_space<vmem>>, %arg2: memref<12x128xf32, #tpu.memory_space<vmem>>, %arg3: memref<1x128xf32, #tpu.memory_space<vmem>>, %arg4: memref<128x128xf32, #tpu.memory_space<vmem>>, %arg5: memref<1x128xf32, #tpu.memory_space<vmem>>, %arg6: memref<1x128xf32, #tpu.memory_space<vmem>>, %arg7: memref<1x1xf32, #tpu.memory_space<vmem>>, %arg8: memref<8x1xf32, #tpu.memory_space<vmem>>) attributes {dimension_semantics = [#tpu.dimension_semantics<parallel>], iteration_bounds = array<i64: 1>, scalar_prefetch = 0 : i64, scratch_operands = 0 : i64, tpu.core_type = #tpu.core_type<tc>, window_params = [{transform_indices = @transform_0, window_bounds = array<i64: 8, 12>}, {pipeline_mode = #tpu.pipeline_mode<synchronous>, transform_indices = @transform_1, window_bounds = array<i64: 12, 128>}, {pipeline_mode = #tpu.pipeline_mode<synchronous>, transform_indices = @transform_2, window_bounds = array<i64: 1, 128>}, {pipeline_mode = #tpu.pipeline_mode<synchronous>, transform_indices = @transform_3, window_bounds = array<i64: 128, 128>}, {pipeline_mode = #tpu.pipeline_mode<synchronous>, transform_indices = @transform_4, window_bounds = array<i64: 1, 128>}, {pipeline_mode = #tpu.pipeline_mode<synchronous>, transform_indices = @transform_5, window_bounds = array<i64: 1, 128>}, {pipeline_mode = #tpu.pipeline_mode<synchronous>, transform_indices = @transform_6, window_bounds = array<i64: 1, 1>}, {transform_indices = @transform_7, window_bounds = array<i64: 8, 1>}]} {
    %c0 = arith.constant 0 : index
    %c0_0 = arith.constant 0 : index
    %0 = vector.load %arg1[%c0, %c0_0] : memref<8x12xf32, #tpu.memory_space<vmem>>, vector<8x12xf32>
    %c0_1 = arith.constant 0 : index
    %c0_2 = arith.constant 0 : index
    %1 = vector.load %arg2[%c0_1, %c0_2] : memref<12x128xf32, #tpu.memory_space<vmem>>, vector<12x128xf32>
    %cst = arith.constant dense<0.000000e+00> : vector<8x128xf32>
    %2 = tpu.matmul %0, %1, %cst {dimension_numbers = #tpu.dot_dimension_numbers<[1], [0], [0], [1], [0, 0, 1, 1], [], []>, precision = #tpu.contract_precision<fp32>} : vector<8x12xf32>, vector<12x128xf32>, vector<8x128xf32> -> vector<8x128xf32>
    %c0_3 = arith.constant 0 : index
    %c0_4 = arith.constant 0 : index
    %3 = vector.load %arg3[%c0_3, %c0_4] : memref<1x128xf32, #tpu.memory_space<vmem>>, vector<1x128xf32>
    %4 = vector.broadcast %3 : vector<1x128xf32> to vector<8x128xf32>
    %5 = arith.addf %2, %4 : vector<8x128xf32>
    %cst_5 = arith.constant 0.000000e+00 : f32
    %6 = vector.broadcast %cst_5 : f32 to vector<8x128xf32>
    %7 = arith.maximumf %5, %6 : vector<8x128xf32>
    %c0_6 = arith.constant 0 : index
    %c0_7 = arith.constant 0 : index
    %8 = vector.load %arg4[%c0_6, %c0_7] : memref<128x128xf32, #tpu.memory_space<vmem>>, vector<128x128xf32>
    %cst_8 = arith.constant dense<0.000000e+00> : vector<8x128xf32>
    %9 = tpu.matmul %7, %8, %cst_8 {dimension_numbers = #tpu.dot_dimension_numbers<[1], [0], [0], [1], [0, 0, 1, 1], [], []>, precision = #tpu.contract_precision<fp32>} : vector<8x128xf32>, vector<128x128xf32>, vector<8x128xf32> -> vector<8x128xf32>
    %c0_9 = arith.constant 0 : index
    %c0_10 = arith.constant 0 : index
    %10 = vector.load %arg5[%c0_9, %c0_10] : memref<1x128xf32, #tpu.memory_space<vmem>>, vector<1x128xf32>
    %11 = vector.broadcast %10 : vector<1x128xf32> to vector<8x128xf32>
    %12 = arith.addf %9, %11 : vector<8x128xf32>
    %cst_11 = arith.constant 0.000000e+00 : f32
    %13 = vector.broadcast %cst_11 : f32 to vector<8x128xf32>
    %14 = arith.maximumf %12, %13 : vector<8x128xf32>
    %c0_12 = arith.constant 0 : index
    %c0_13 = arith.constant 0 : index
    %15 = vector.load %arg6[%c0_12, %c0_13] : memref<1x128xf32, #tpu.memory_space<vmem>>, vector<1x128xf32>
    %16 = vector.broadcast %15 : vector<1x128xf32> to vector<8x128xf32>
    %17 = arith.mulf %14, %16 : vector<8x128xf32>
    %cst_14 = arith.constant dense<0.000000e+00> : vector<8xf32>
    %18 = vector.multi_reduction <add>, %17, %cst_14 [1] : vector<8x128xf32> to vector<8xf32>
    %19 = vector.shape_cast %18 : vector<8xf32> to vector<8x1xf32>
    %c0_15 = arith.constant 0 : index
    %c0_16 = arith.constant 0 : index
    %20 = vector.load %arg7[%c0_15, %c0_16] : memref<1x1xf32, #tpu.memory_space<vmem>>, vector<1x1xf32>
    %21 = vector.broadcast %20 : vector<1x1xf32> to vector<8x1xf32>
    %22 = arith.addf %19, %21 : vector<8x1xf32>
    %c0_17 = arith.constant 0 : index
    %c0_18 = arith.constant 0 : index
    %23 = vector.load %arg8[%c0_17, %c0_18] : memref<8x1xf32, #tpu.memory_space<vmem>>, vector<8x1xf32>
    tpu.vector_store %arg8[%c0_17, %c0_18], %22 {strides = array<i32>} : memref<8x1xf32, #tpu.memory_space<vmem>>, vector<8x1xf32>,
    return
  }
  func.func @transform_0(%arg0: i32) -> (i32, i32) {
    %c0_i32 = arith.constant 0 : i32
    %c0_i32_0 = arith.constant 0 : i32
    return %arg0, %c0_i32 : i32, i32
  }
  func.func @transform_1(%arg0: i32) -> (i32, i32) {
    %c0_i32 = arith.constant 0 : i32
    %c0_i32_0 = arith.constant 0 : i32
    %c0_i32_1 = arith.constant 0 : i32
    return %c0_i32, %c0_i32_0 : i32, i32
  }
  func.func @transform_2(%arg0: i32) -> (i32, i32) {
    %c0_i32 = arith.constant 0 : i32
    %c0_i32_0 = arith.constant 0 : i32
    %c0_i32_1 = arith.constant 0 : i32
    return %c0_i32, %c0_i32_0 : i32, i32
  }
  func.func @transform_3(%arg0: i32) -> (i32, i32) {
    %c0_i32 = arith.constant 0 : i32
    %c0_i32_0 = arith.constant 0 : i32
    %c0_i32_1 = arith.constant 0 : i32
    return %c0_i32, %c0_i32_0 : i32, i32
  }
  func.func @transform_4(%arg0: i32) -> (i32, i32) {
    %c0_i32 = arith.constant 0 : i32
    %c0_i32_0 = arith.constant 0 : i32
    %c0_i32_1 = arith.constant 0 : i32
    return %c0_i32, %c0_i32_0 : i32, i32
  }
  func.func @transform_5(%arg0: i32) -> (i32, i32) {
    %c0_i32 = arith.constant 0 : i32
    %c0_i32_0 = arith.constant 0 : i32
    %c0_i32_1 = arith.constant 0 : i32
    return %c0_i32, %c0_i32_0 : i32, i32
  }
  func.func @transform_6(%arg0: i32) -> (i32, i32) {
    %c0_i32 = arith.constant 0 : i32
    %c0_i32_0 = arith.constant 0 : i32
    %c0_i32_1 = arith.constant 0 : i32
    return %c0_i32, %c0_i32_0 : i32, i32
  }
  func.func @transform_7(%arg0: i32) -> (i32, i32) {
    %c0_i32 = arith.constant 0 : i32
    %c0_i32_0 = arith.constant 0 : i32
    return %arg0, %c0_i32 : i32, i32
  }
}

</mosaic_0001>

<bundles_post_ra>
// kernel: tpu_custom_call.1
= control target key start
LH: loop header
LB: loop body
LE: loop exit
PB: predicated region body
PF: predicated region fallthrough
CT: control target
= control target key end

     0   :  { %s2256_s0 = inlined_call_operand.hbm [shape: f32[8,12], index: 0, kind: input, shape index: {}]   ;;  %s2257_s1 = inlined_call_operand.hbm [shape: f32[12,128], index: 1, kind: input, shape index: {}]   ;;  %s2258_s2 = inlined_call_operand.vmem [shape: f32[1,128], index: 2, kind: input, shape index: {}]   ;;  %s2259_s3 = inlined_call_operand.hbm [shape: f32[128,128], index: 3, kind: input, shape index: {}]   ;;  %s2260_s4 = inlined_call_operand.vmem [shape: f32[1,128], index: 4, kind: input, shape index: {}]   ;;  %s2261_s5 = inlined_call_operand.vmem [shape: f32[1,128], index: 5, kind: input, shape index: {}]   ;;  %s2262_s6 = inlined_call_operand.<no memory space> [shape: f32[1,1], index: 6, kind: input, shape index: {}]   ;;  %s2263_s7 = inlined_call_operand.vmem [shape: f32[8,1], index: 7, kind: output, shape index: {}]  }
   0x1   :  { %v12_v0 = vstv %s2262_s6 }
   0x2   :  { %13 = vst [vmem:[#allocation2] sm:$0x1] %v12_v0 }
   0x3   :  { %14 = vsyncpa [#allocation4], 0 }
   0x4   :  { %15 = vsyncpa [#allocation6], 0  ;;  %s1872_s26 = smov [#allocation5]   ;;  %s1802_s30 = scalar_lea.hbm %s2257_s1, 256 }
   0x5   :  { %s31_s27 = sshll.u32 %s1872_s26, 4  ;;  %p1803_p0 = scmp.ne.s32.totalorder %s2257_s1, %s1802_s30  ;;  %s32_s27 = int_to_ptr.vmem [resolvable:$true] %s31_s27 }
   0x6   :  { %p1806_p1 = scmp.lt.u32.totalorder %s1802_s30, %s2257_s1 }
   0x8   :  { %p1808_p2 = pnand %p1806_p1, %p1803_p0 }
   0xa   :  { %1811 = shalt.err (!%p1808_p2)
}
   0xb   :  { %s1812_s6 = scalar_lea.vmem %s32_s27, 256  ;;  %p1817_p4 = scmp.lt.s32.totalorder %s32_s27, %s32_s27 }
   0xc   :  { %p1813_p3 = scmp.ne.s32.totalorder %s32_s27, %s1812_s6  ;;  %p1818_p5 = scmp.lt.s32.totalorder %s1812_s6, %s1812_s6 }
   0xe   :  { %p1819_p6 = por %p1818_p5, %p1817_p4 }
  0x10   :  { %p1820_p7 = pnand %p1819_p6, %p1813_p3 }
  0x12   :  { %1823 = shalt.err (!%p1820_p7)
}
  0x13   :  { %s1873_s12 = smov 128   ;;  %s1874_s13 = smov 8  }
  0x14   :  { %37 = dma.hbm_to_vmem [thread:$0]  %s2257_s1, 256, %s32_s27, [#allocation6], %s1873_s12, %s1873_s12, %s1874_s13  }
  0x15   :  { %s1875_s16 = smov [#allocation3]   ;;  %s1876_s18 = smov [#allocation7]  }
  0x16   :  { %s22_s17 = sshll.u32 %s1875_s16, 4  ;;  %s45_s19 = sshll.u32 %s1876_s18, 4  ;;  %s23_s17 = int_to_ptr.vmem [resolvable:$true] %s22_s17  ;;  %s46_s19 = int_to_ptr.vmem [resolvable:$true] %s45_s19 }
  0x17   :  { %s1824_s22 = scalar_lea.hbm %s2256_s0, 128 }
  0x18   :  { %p1825_p8 = scmp.ne.s32.totalorder %s2256_s0, %s1824_s22  ;;  %p1828_p9 = scmp.lt.u32.totalorder %s1824_s22, %s2256_s0 }
  0x1a   :  { %p1830_p10 = pnand %p1828_p9, %p1825_p8 }
  0x1c   :  { %1833 = shalt.err (!%p1830_p10)
}
  0x1d   :  { %s1834_s1 = scalar_lea.vmem %s23_s17, 128  ;;  %p1839_p12 = scmp.lt.s32.totalorder %s23_s17, %s23_s17 }
  0x1e   :  { %p1835_p11 = scmp.ne.s32.totalorder %s23_s17, %s1834_s1  ;;  %p1840_p13 = scmp.lt.s32.totalorder %s1834_s1, %s1834_s1 }
  0x20   :  { %p1841_p0 = por %p1840_p13, %p1839_p12 }
  0x22   :  { %p1842_p1 = pnand %p1841_p0, %p1835_p11 }
  0x24   :  { %1845 = shalt.err (!%p1842_p1)
}
  0x25   :  { %25 = dma.hbm_to_vmem [thread:$0]  %s2256_s0, 128, %s23_s17, [#allocation4]  }
  0x26   :  { %s1846_s8 = scalar_lea.hbm %s2259_s3, 2048 }
  0x27   :  { %p1847_p2 = scmp.ne.s32.totalorder %s2259_s3, %s1846_s8  ;;  %p1850_p3 = scmp.lt.u32.totalorder %s1846_s8, %s2259_s3 }
  0x29   :  { %p1852_p4 = pnand %p1850_p3, %p1847_p2 }
  0x2b   :  { %1855 = shalt.err (!%p1852_p4)
}
  0x2c   :  { %s1856_s14 = scalar_lea.vmem %s46_s19, 2048  ;;  %p1861_p6 = scmp.lt.s32.totalorder %s46_s19, %s46_s19 }
  0x2d   :  { %p1857_p5 = scmp.ne.s32.totalorder %s46_s19, %s1856_s14  ;;  %p1862_p7 = scmp.lt.s32.totalorder %s1856_s14, %s1856_s14 }
  0x2f   :  { %p1863_p8 = por %p1862_p7, %p1861_p6 }
  0x31   :  { %p1864_p9 = pnand %p1863_p8, %p1857_p5 }
  0x33   :  { %1867 = shalt.err (!%p1864_p9)
}
  0x34   :  { %51 = dma.hbm_to_vmem [thread:$0]  %s2259_s3, 2048, %s46_s19, [#allocation6], %s1873_s12, %s1873_s12, %s1874_s13  }
  0x35   :  { %1868 = dma.done.wait [#allocation4], 128  }
  0x36   :  { %1869 = vsyncadd [#allocation4], 4294967168 }
  0x37   :  { %1870 = dma.done.wait [#allocation6], 2304  }
  0x38   :  { %1871 = vsyncadd [#allocation6], 4294964992  ;;  %v1877_v1 = vmov 0.0|0.0   ;;  %vm1878_vm0 = vmmov 0   ;;  %v1879_v2 = vmov 0.0   ;;  %vm81_vm1 = vcmask 1043456  }
  0x39   :  { %1621 = vmatprep.subr.bf16.mxu0 %v1877_v1  ;;  %1612 = vmatprep.subr.bf16.mxu1 %v1877_v1  ;;  %vm77_vm2 = vcmask 97280   ;;  %v68_v3 = vld [vmem:[#allocation5] sm:$0xff]  ;;  %v69_v4 = vld [vmem:[#allocation5 + $0x8] sm:$0xf]  ;;  %v67_v5 = vld [vmem:[#allocation3] sm:$0xff]  ;;  %vm1228_vm3 = vcmask 7168  }
  0x3a   :  { %1385 = vmatprep.mubr.msk.f32.mxu0 %vm1878_vm0, %v1879_v2  ;;  %1364 = vmatprep.mubr.msk.f32.mxu1 %vm1878_vm0, %v1879_v2  ;;  %v83_v6 = vsel %vm81_vm1, %v69_v4, 0  ;;  %v86_v7 = vand.u32 4294901760, %v68_v3  ;;  %v79_v8 = vsel %vm77_vm2, %v67_v5, 0  ;;  %v1971_v9 = vld [vmem:[#allocation7] sm:$0xff]  ;;  %v546_v10 = vld [vmem:[#allocation7 + $0x8] sm:$0xff]  ;;  %v1973_v11 = vld [vmem:[#allocation7 + $0x10] sm:$0xff] }
  0x3b   :  { %v89_v12 = vand.u32 4294901760, %v83_v6  ;;  %v152_v13 = vand.u32 4294901760, %v79_v8  ;;  %v1975_v14 = vld [vmem:[#allocation7 + $0x18] sm:$0xff]  ;;  %v1977_v15 = vld [vmem:[#allocation7 + $0x20] sm:$0xff]  ;;  %v569_v17 = vand.u32 4294901760, %v1971_v9  ;;  %v572_v18 = vand.u32 4294901760, %v546_v10 }
  0x3c   :  { %v164_v16 = vsub.f32 %v68_v3, %v86_v7  ;;  %v575_v19 = vand.u32 4294901760, %v1973_v11  ;;  %v578_v23 = vand.u32 4294901760, %v1975_v14  ;;  %v550_v24 = vld [vmem:[#allocation7 + $0x28] sm:$0xff]  ;;  %v581_v28 = vand.u32 4294901760, %v1977_v15  ;;  %v551_v29 = vld [vmem:[#allocation7 + $0x30] sm:$0xff]  ;;  %v552_v33 = vld [vmem:[#allocation7 + $0x38] sm:$0xff] }
  0x3d   :  { %v1613_v20 = vpack.c.bf16 %v89_v12, %v86_v7  ;;  %v171_v21 = vsub.f32 %v83_v6, %v89_v12  ;;  %v153_v22 = vsub.f32 %v79_v8, %v152_v13  ;;  %v1983_v26 = vsub.f32 %v1971_v9, %v569_v17  ;;  %v553_v55 = vld [vmem:[#allocation7 + $0x40] sm:$0xff]  ;;  %v554_v56 = vld [vmem:[#allocation7 + $0x48] sm:$0xff]  ;;  %v555_v60 = vld [vmem:[#allocation7 + $0x50] sm:$0xff] }
  0x3e   :  { %v165_v25 = vand.u32 4294901760, %v164_v16  ;;  %v1985_v27 = vsub.f32 %v546_v10, %v572_v18  ;;  %v1989_v32 = vsub.f32 %v1973_v11, %v575_v19  ;;  %v1994_v35 = vsub.f32 %v1975_v14, %v578_v23  ;;  %v556_v61 = vld [vmem:[#allocation7 + $0x58] sm:$0xff]  ;;  %v557_v5 = vld [vmem:[#allocation7 + $0x60] sm:$0xff]  ;;  %v558_v6 = vld [vmem:[#allocation7 + $0x68] sm:$0xff] }
  0x3f   :  { %1623 = vmatpush3.bf16.msra.mxu0 %v1613_v20  ;;  %1614 = vmatpush3.bf16.msra.mxu1 %v1613_v20  ;;  %v154_v30 = vand.u32 4294901760, %v153_v22  ;;  %v172_v31 = vand.u32 4294901760, %v171_v21  ;;  %v584_v36 = vand.u32 4294901760, %v550_v24  ;;  %v1997_v37 = vsub.f32 %v1977_v15, %v581_v28  ;;  %v559_v10 = vld [vmem:[#allocation7 + $0x70] sm:$0xff]  ;;  %v560_v11 = vld [vmem:[#allocation7 + $0x78] sm:$0xff] }
  0x40   :  { %1615 = vmatprep.subr.bf16.mxu1 %v1877_v1  ;;  %1624 = vmatprep.subr.bf16.mxu0 %v1877_v1  ;;  %v166_v34 = vsub.f32 %v164_v16, %v165_v25  ;;  %v587_v41 = vand.u32 4294901760, %v551_v29  ;;  %v590_v44 = vand.u32 4294901760, %v552_v33  ;;  %v1619_v50 = vpack.c.bf16 %v171_v21, %v164_v16 }
  0x41   :  { %v155_v38 = vsub.f32 %v153_v22, %v154_v30  ;;  %v173_v39 = vsub.f32 %v171_v21, %v172_v31  ;;  %v1625_v40 = vpack.c.bf16 %v172_v31, %v165_v25  ;;  %v1999_v43 = vsub.f32 %v550_v24, %v584_v36 }
  0x42   :  { %1386 = vmatmul.mubr.f32.vlgmr.msra.gmra.mrb[0].mxu0 %v154_v30  ;;  %v167_v42 = vand.u32 4294901760, %v166_v34  ;;  %v2003_v47 = vsub.f32 %v551_v29, %v587_v41  ;;  %v2006_v48 = vsub.f32 %v552_v33, %v590_v44  ;;  %v2017_v51 = vpack.c.bf16 %v572_v18, %v569_v17 }
  0x43   :  { %v156_v45 = vand.u32 4294901760, %v155_v38  ;;  %v174_v46 = vand.u32 4294901760, %v173_v39  ;;  %1626 = vmatpush3.bf16.msra.mxu0 %v1625_v40  ;;  %1392 = vmatprep.mubr.msk.f32.mxu0 %vm1878_vm0, %v1879_v2  ;;  %v2023_v52 = vpack.c.bf16 %v578_v23, %v575_v19  ;;  %v2031_v53 = vpack.c.bf16 %v584_v36, %v581_v28 }
  0x44   :  { %1627 = vmatprep.subr.bf16.mxu0 %v1877_v1  ;;  %v2037_v54 = vpack.c.bf16 %v590_v44, %v587_v41  ;;  %v593_v57 = vand.u32 4294901760, %v553_v55  ;;  %v596_v58 = vand.u32 4294901760, %v554_v56  ;;  %v599_v0 = vand.u32 4294901760, %v555_v60 }
  0x45   :  { %1365 = vmatmul.mubr.f32.vlgmr.msra.gmra.mrb[0].mxu1 %v156_v45  ;;  %v1616_v49 = vpack.c.bf16 %v174_v46, %v167_v42  ;;  %v602_v3 = vand.u32 4294901760, %v556_v61  ;;  %v605_v7 = vand.u32 4294901760, %v557_v5  ;;  %v608_v8 = vand.u32 4294901760, %v558_v6 }
  0x46   :  { %1371 = vmatprep.mubr.msk.f32.mxu1 %vm1878_vm0, %v1879_v2  ;;  %v2045_v59 = vpack.c.bf16 %v596_v58, %v593_v57  ;;  %v2047_v62 = vsub.f32 %v553_v55, %v593_v57  ;;  %v2049_v63 = vsub.f32 %v554_v56, %v596_v58  ;;  %v611_v12 = vand.u32 4294901760, %v559_v10 }
  0x47   :  { %1617 = vmatpush3.bf16.msra.mxu1 %v1616_v49  ;;  %v2055_v4 = vpack.c.bf16 %v602_v3, %v599_v0  ;;  %v2061_v9 = vpack.c.bf16 %v608_v8, %v605_v7  ;;  %v2069_v15 = vsub.f32 %v555_v60, %v599_v0  ;;  %v2071_v16 = vsub.f32 %v556_v61, %v602_v3 }
  0x48   :  { %1618 = vmatprep.subr.bf16.mxu1 %v1877_v1  ;;  %v2073_v17 = vsub.f32 %v557_v5, %v605_v7  ;;  %v2075_v18 = vsub.f32 %v558_v6, %v608_v8  ;;  %v2078_v19 = vsub.f32 %v559_v10, %v611_v12  ;;  %v662_v21 = vand.u32 4294901760, %v1983_v26 }
  0x49   :  { %v676_v30 = vand.u32 4294901760, %v1989_v32  ;;  %v683_v31 = vand.u32 4294901760, %v1994_v35  ;;  %v690_v41 = vand.u32 4294901760, %v1997_v37  ;;  %v697_v42 = vand.u32 4294901760, %v1999_v43 }
  0x4a   :  { %1393 = vmatmul.mubr.f32.vlgmr.msra.gmra.mrb[0].mxu0 %v152_v13  ;;  %v663_v24 = vsub.f32 %v1983_v26, %v662_v21  ;;  %v704_v56 = vand.u32 4294901760, %v2003_v47  ;;  %v711_v57 = vand.u32 4294901760, %v2006_v48  ;;  %v718_v6 = vand.u32 4294901760, %v2047_v62 }
  0x4b   :  { %1629 = vmatpush3.bf16.msra.mxu0 %v1613_v20  ;;  %1399 = vmatprep.mubr.msk.f32.mxu0 %vm1878_vm0, %v1879_v2  ;;  %v2095_v34 = vpack.c.bf16 %v683_v31, %v676_v30  ;;  %v677_v36 = vsub.f32 %v1989_v32, %v676_v30  ;;  %v684_v38 = vsub.f32 %v1994_v35, %v683_v31  ;;  %v725_v7 = vand.u32 4294901760, %v2049_v63 }
  0x4c   :  { %1630 = vmatprep.subr.bf16.mxu0 %v1877_v1  ;;  %v664_v28 = vand.u32 4294901760, %v663_v24  ;;  %v2103_v45 = vpack.c.bf16 %v697_v42, %v690_v41  ;;  %v691_v46 = vsub.f32 %v1997_v37, %v690_v41  ;;  %v698_v49 = vsub.f32 %v1999_v43, %v697_v42 }
  0x4d   :  { %1372 = vmatmul.mubr.f32.vlgmr.msra.gmra.mrb[0].mxu1 %v152_v13  ;;  %v678_v39 = vand.u32 4294901760, %v677_v36  ;;  %v685_v40 = vand.u32 4294901760, %v684_v38  ;;  %v2111_v60 = vpack.c.bf16 %v711_v57, %v704_v56  ;;  %v705_v61 = vsub.f32 %v2003_v47, %v704_v56 }
  0x4e   :  { %1620 = vmatpush3.bf16.msra.mxu1 %v1619_v50  ;;  %1378 = vmatprep.mubr.msk.f32.mxu1 %vm1878_vm0, %v1879_v2  ;;  %v692_v50 = vand.u32 4294901760, %v691_v46  ;;  %v699_v55 = vand.u32 4294901760, %v698_v49  ;;  %v712_v0 = vsub.f32 %v2006_v48, %v711_v57  ;;  %v2119_v10 = vpack.c.bf16 %v725_v7, %v718_v6 }
  0x4f   :  { %1702 = vmatprep.subr.bf16.mxu1 %v1877_v1  ;;  %v2101_v44 = vpack.c.bf16 %v685_v40, %v678_v39  ;;  %v706_v3 = vand.u32 4294901760, %v705_v61  ;;  %v739_v24 = vand.u32 4294901760, %v2071_v16  ;;  %v746_v38 = vand.u32 4294901760, %v2073_v17 }
  0x50   :  { %v2109_v58 = vpack.c.bf16 %v699_v55, %v692_v50  ;;  %v713_v5 = vand.u32 4294901760, %v712_v0  ;;  %v753_v39 = vand.u32 4294901760, %v2075_v18  ;;  %v760_v55 = vand.u32 4294901760, %v2078_v19 }
  0x51   :  { %v740_v30 = vsub.f32 %v2071_v16, %v739_v24  ;;  %v747_v42 = vsub.f32 %v2073_v17, %v746_v38 }
  0x52   :  { %1400 = vmatmul.mubr.f32.vlgmr.msra.gmra.mrb[0].mxu0 %v152_v13  ;;  %v614_v13 = vand.u32 4294901760, %v560_v11  ;;  %v2117_v8 = vpack.c.bf16 %v713_v5, %v706_v3  ;;  %v1745_v41 = vpack.c.bf16 %v753_v39, %v746_v38  ;;  %v754_v46 = vsub.f32 %v2075_v18, %v753_v39 }
  0x53   :  { %1632 = vmatpush3.bf16.msra.mxu0 %v2017_v51  ;;  %1434 = vmatprep.mubr.msk.f32.mxu0 %vm1878_vm0, %v1879_v2  ;;  %v741_v36 = vand.u32 4294901760, %v740_v30  ;;  %v748_v49 = vand.u32 4294901760, %v747_v42  ;;  %v761_v0 = vsub.f32 %v2078_v19, %v760_v55 }
  0x54   :  { %1633 = vmatprep.subr.bf16.mxu0 %v1877_v1  ;;  %v2067_v14 = vpack.c.bf16 %v614_v13, %v611_v12  ;;  %v2080_v20 = vsub.f32 %v560_v11, %v614_v13  ;;  %v719_v11 = vsub.f32 %v2047_v62, %v718_v6  ;;  %v726_v12 = vsub.f32 %v2049_v63, %v725_v7 }
  0x55   :  { %1379 = vmatmul.mubr.f32.vlgmr.msra.gmra.mrb[0].mxu1 %v153_v22  ;;  %v669_v22 = vand.u32 4294901760, %v1985_v27  ;;  %v755_v50 = vand.u32 4294901760, %v754_v46  ;;  %v762_v5 = vand.u32 4294901760, %v761_v0 }
  0x56   :  { %1704 = vmatpush3.bf16.msra.mxu1 %v2017_v51  ;;  %1539 = vmatprep.mubr.msk.f32.mxu1 %vm1878_vm0, %v1879_v2  ;;  %v720_v13 = vand.u32 4294901760, %v719_v11  ;;  %v767_v56 = vand.u32 4294901760, %v2080_v20  ;;  %v1679_v11 = vpack.c.bf16 %v1985_v27, %v1983_v26  ;;  %v1700_v26 = vpack.c.bf16 %v2080_v20, %v2078_v19 }
  0x57   :  { %1705 = vmatprep.subr.bf16.mxu1 %v1877_v1  ;;  %1635 = vmatpush3.bf16.msra.mxu0 %v2023_v52  ;;  %v2087_v23 = vpack.c.bf16 %v669_v22, %v662_v21  ;;  %v670_v25 = vsub.f32 %v1985_v27, %v669_v22  ;;  %v727_v21 = vand.u32 4294901760, %v726_v12  ;;  %v732_v22 = vand.u32 4294901760, %v2069_v15 }
  0x58   :  { %1636 = vmatprep.subr.bf16.mxu0 %v1877_v1  ;;  %v1673_v57 = vpack.c.bf16 %v755_v50, %v748_v49  ;;  %v1748_v61 = vpack.c.bf16 %v767_v56, %v760_v55  ;;  %v768_v3 = vsub.f32 %v2080_v20, %v767_v56  ;;  %v1682_v12 = vpack.c.bf16 %v1994_v35, %v1989_v32  ;;  %v1237_v35 = vld [vmem:[%s2260_s4] ss:$0 sm:$0xff] }
  0x59   :  { %v671_v29 = vand.u32 4294901760, %v670_v25  ;;  %v2125_v25 = vpack.c.bf16 %v727_v21, %v720_v13  ;;  %v1685_v13 = vpack.c.bf16 %v1999_v43, %v1997_v37  ;;  %v1688_v21 = vpack.c.bf16 %v2006_v48, %v2003_v47 }
  0x5a   :  { %1707 = vmatpush3.bf16.msra.mxu1 %v2023_v52  ;;  %v769_v6 = vand.u32 4294901760, %v768_v3 }
  0x5b   :  { %1708 = vmatprep.subr.bf16.mxu1 %v1877_v1  ;;  %1638 = vmatpush3.bf16.msra.mxu0 %v2031_v53  ;;  %v2093_v33 = vpack.c.bf16 %v671_v29, %v664_v28  ;;  %v2127_v28 = vpack.c.bf16 %v739_v24, %v732_v22  ;;  %v733_v29 = vsub.f32 %v2069_v15, %v732_v22 }
  0x5c   :  { %1639 = vmatprep.subr.bf16.mxu0 %v1877_v1  ;;  %v1676_v7 = vpack.c.bf16 %v769_v6, %v762_v5  ;;  %v1691_v22 = vpack.c.bf16 %v2049_v63, %v2047_v62  ;;  %v1694_v24 = vpack.c.bf16 %v2071_v16, %v2069_v15 }
  0x5d   :  { %v734_v31 = vand.u32 4294901760, %v733_v29  ;;  %v1697_v29 = vpack.c.bf16 %v2075_v18, %v2073_v17 }
  0x5e   :  { %1710 = vmatpush3.bf16.msra.mxu1 %v2031_v53 }
  0x5f   :  { %1711 = vmatprep.subr.bf16.mxu1 %v1877_v1  ;;  %1641 = vmatpush3.bf16.msra.mxu0 %v2037_v54  ;;  %v1670_v40 = vpack.c.bf16 %v741_v36, %v734_v31  ;;  %v1236_v31 = vld [vmem:[%s2258_s2] ss:$0 sm:$0xff] }
  0x60   :  { %1642 = vmatprep.subr.bf16.mxu0 %v1877_v1 }
  0x62   :  { %1713 = vmatpush3.bf16.msra.mxu1 %v2037_v54 }
  0x63   :  { %1714 = vmatprep.subr.bf16.mxu1 %v1877_v1  ;;  %1644 = vmatpush3.bf16.msra.mxu0 %v2045_v59 }
  0x64   :  { %1645 = vmatprep.subr.bf16.mxu0 %v1877_v1 }
  0x66   :  { %1716 = vmatpush3.bf16.msra.mxu1 %v2045_v59 }
  0x67   :  { %1717 = vmatprep.subr.bf16.mxu1 %v1877_v1  ;;  %1647 = vmatpush3.bf16.msra.mxu0 %v2055_v4 }
  0x68   :  { %1648 = vmatprep.subr.bf16.mxu0 %v1877_v1 }
  0x6a   :  { %1719 = vmatpush3.bf16.msra.mxu1 %v2055_v4 }
  0x6b   :  { %1720 = vmatprep.subr.bf16.mxu1 %v1877_v1  ;;  %1650 = vmatpush3.bf16.msra.mxu0 %v2061_v9 }
  0x6c   :  { %1651 = vmatprep.subr.bf16.mxu0 %v1877_v1 }
  0x6e   :  { %1722 = vmatpush3.bf16.msra.mxu1 %v2061_v9 }
  0x6f   :  { %1723 = vmatprep.subr.bf16.mxu1 %v1877_v1  ;;  %1653 = vmatpush3.bf16.msra.mxu0 %v2067_v14 }
  0x70   :  { %1654 = vmatprep.subr.bf16.mxu0 %v1877_v1 }
  0x72   :  { %1725 = vmatpush3.bf16.msra.mxu1 %v2067_v14 }
  0x73   :  { %1726 = vmatprep.subr.bf16.mxu1 %v1877_v1 }
 0x125   :  { %v540_v27 = vpop.f32.mrb[0].mxu0 }
 0x126   :  { %v1401_v30 = vpop.f32.mrb[1].mxu0 }
 0x128   :  { %v315_v36 = vpop.f32.mrb[0].mxu1 }
 0x129   :  { %v1774_v38 = vadd.f32 %v1236_v31, %v315_v36  ;;  %v1380_v39 = vpop.f32.mrb[1].mxu1 }
 0x12b   :  { %v1775_v42 = vadd.f32 %v1774_v38, %v540_v27 }
 0x12d   :  { %v544_v46 = vmax.f32 %v1775_v42, 0.0 }
 0x12f   :  { %v2158_v49 = vand.u32 4294901760, %v544_v46 }
 0x131   :  { %v2161_v50 = vsub.f32 %v544_v46, %v2158_v49 }
 0x133   :  { %v651_v55 = vand.u32 4294901760, %v2161_v50 }
 0x135   :  { %1540 = vmatmul.mubr.f32.vlgmr.msra.gmra.mrb[2].mxu1 %v651_v55  ;;  %v652_v56 = vsub.f32 %v2161_v50, %v651_v55 }
 0x136   :  { %1728 = vmatpush3.bf16.msra.mxu1 %v2087_v23  ;;  %1574 = vmatprep.mubr.msk.f32.mxu1 %vm1878_vm0, %v1879_v2 }
 0x137   :  { %1729 = vmatprep.subr.bf16.mxu1 %v1877_v1  ;;  %v653_v0 = vand.u32 4294901760, %v652_v56 }
 0x139   :  { %1435 = vmatmul.mubr.f32.vlgmr.msra.gmra.mrb[2].mxu0 %v653_v0 }
 0x13a   :  { %1656 = vmatpush3.bf16.msra.mxu0 %v2093_v33  ;;  %1731 = vmatpush3.bf16.msra.mxu1 %v2095_v34 }
 0x13b   :  { %1657 = vmatprep.subr.bf16.mxu0 %v1877_v1  ;;  %1732 = vmatprep.subr.bf16.mxu1 %v1877_v1 }
 0x13c   :  { %1469 = vmatprep.mubr.msk.f32.mxu0 %vm1878_vm0, %v1879_v2 }
 0x13e   :  { %1659 = vmatpush3.bf16.msra.mxu0 %v2101_v44  ;;  %1734 = vmatpush3.bf16.msra.mxu1 %v2103_v45 }
 0x13f   :  { %1660 = vmatprep.subr.bf16.mxu0 %v1877_v1  ;;  %1735 = vmatprep.subr.bf16.mxu1 %v1877_v1 }
 0x142   :  { %1662 = vmatpush3.bf16.msra.mxu0 %v2109_v58  ;;  %1737 = vmatpush3.bf16.msra.mxu1 %v2111_v60 }
 0x143   :  { %1663 = vmatprep.subr.bf16.mxu0 %v1877_v1  ;;  %1738 = vmatprep.subr.bf16.mxu1 %v1877_v1 }
 0x146   :  { %1665 = vmatpush3.bf16.msra.mxu0 %v2117_v8  ;;  %1740 = vmatpush3.bf16.msra.mxu1 %v2119_v10 }
 0x147   :  { %1666 = vmatprep.subr.bf16.mxu0 %v1877_v1  ;;  %1741 = vmatprep.subr.bf16.mxu1 %v1877_v1 }
 0x14a   :  { %1668 = vmatpush3.bf16.msra.mxu0 %v2125_v25  ;;  %1743 = vmatpush3.bf16.msra.mxu1 %v2127_v28 }
 0x14b   :  { %1669 = vmatprep.subr.bf16.mxu0 %v1877_v1  ;;  %1744 = vmatprep.subr.bf16.mxu1 %v1877_v1 }
 0x14e   :  { %1671 = vmatpush3.bf16.msra.mxu0 %v1670_v40  ;;  %1746 = vmatpush3.bf16.msra.mxu1 %v1745_v41 }
 0x14f   :  { %1672 = vmatprep.subr.bf16.mxu0 %v1877_v1  ;;  %1747 = vmatprep.subr.bf16.mxu1 %v1877_v1 }
 0x152   :  { %1674 = vmatpush3.bf16.msra.mxu0 %v1673_v57  ;;  %1749 = vmatpush3.bf16.msra.mxu1 %v1748_v61 }
 0x153   :  { %1675 = vmatprep.subr.bf16.mxu0 %v1877_v1  ;;  %1750 = vmatprep.subr.bf16.mxu1 %v1877_v1 }
 0x155   :  { %1575 = vmatmul.mubr.f32.vlgmr.msra.gmra.mrb[2].mxu1 %v2158_v49 }
 0x156   :  { %1677 = vmatpush3.bf16.msra.mxu0 %v1676_v7  ;;  %1752 = vmatpush3.bf16.msra.mxu1 %v2017_v51 }
 0x157   :  { %1678 = vmatprep.subr.bf16.mxu0 %v1877_v1  ;;  %1753 = vmatprep.subr.bf16.mxu1 %v1877_v1 }
 0x158   :  { %1609 = vmatprep.mubr.msk.f32.mxu1 %vm1878_vm0, %v1879_v2 }
 0x159   :  { %1470 = vmatmul.mubr.f32.vlgmr.msra.gmra.mrb[2].mxu0 %v2158_v49 }
 0x15a   :  { %1680 = vmatpush3.bf16.msra.mxu0 %v1679_v11  ;;  %1755 = vmatpush3.bf16.msra.mxu1 %v2023_v52 }
 0x15b   :  { %1681 = vmatprep.subr.bf16.mxu0 %v1877_v1  ;;  %1756 = vmatprep.subr.bf16.mxu1 %v1877_v1 }
 0x15c   :  { %1504 = vmatprep.mubr.msk.f32.mxu0 %vm1878_vm0, %v1879_v2 }
 0x15e   :  { %1683 = vmatpush3.bf16.msra.mxu0 %v1682_v12  ;;  %1758 = vmatpush3.bf16.msra.mxu1 %v2031_v53  ;;  %v1239_v53 = vld [vmem:[#allocation2] ss:$0 sm:$0xff] }
 0x15f   :  { %1684 = vmatprep.subr.bf16.mxu0 %v1877_v1  ;;  %1759 = vmatprep.subr.bf16.mxu1 %v1877_v1 }
 0x162   :  { %1686 = vmatpush3.bf16.msra.mxu0 %v1685_v13  ;;  %1761 = vmatpush3.bf16.msra.mxu1 %v2037_v54 }
 0x163   :  { %1687 = vmatprep.subr.bf16.mxu0 %v1877_v1  ;;  %1762 = vmatprep.subr.bf16.mxu1 %v1877_v1 }
 0x166   :  { %1689 = vmatpush3.bf16.msra.mxu0 %v1688_v21  ;;  %1764 = vmatpush3.bf16.msra.mxu1 %v2045_v59 }
 0x167   :  { %1690 = vmatprep.subr.bf16.mxu0 %v1877_v1  ;;  %1765 = vmatprep.subr.bf16.mxu1 %v1877_v1 }
 0x16a   :  { %1692 = vmatpush3.bf16.msra.mxu0 %v1691_v22  ;;  %1767 = vmatpush3.bf16.msra.mxu1 %v2055_v4 }
 0x16b   :  { %1693 = vmatprep.subr.bf16.mxu0 %v1877_v1  ;;  %1768 = vmatprep.subr.bf16.mxu1 %v1877_v1 }
 0x16e   :  { %1695 = vmatpush3.bf16.msra.mxu0 %v1694_v24  ;;  %1770 = vmatpush3.bf16.msra.mxu1 %v2061_v9 }
 0x16f   :  { %1696 = vmatprep.subr.bf16.mxu0 %v1877_v1  ;;  %1771 = vmatprep.subr.bf16.mxu1 %v1877_v1 }
 0x172   :  { %1698 = vmatpush3.bf16.msra.mxu0 %v1697_v29  ;;  %1773 = vmatpush3.bf16.msra.mxu1 %v2067_v14 }
 0x173   :  { %1699 = vmatprep.subr.bf16.mxu0 %v1877_v1  ;;  %v1238_v1 = vld [vmem:[%s2261_s5] ss:$0 sm:$0xff] }
 0x175   :  { %1610 = vmatmul.mubr.f32.vlgmr.msra.gmra.mrb[2].mxu1 %v2158_v49 }
 0x176   :  { %1701 = vmatpush3.bf16.msra.mxu0 %v1700_v26 }
 0x179   :  { %1505 = vmatmul.mubr.f32.vlgmr.msra.gmra.mrb[2].mxu0 %v2161_v50 }
 0x248   :  { %v1205_v2 = vpop.f32.mrb[2].mxu1 }
 0x249   :  { %v1611_v32 = vpop.f32.mrb[3].mxu1 }
 0x24c   :  { %v910_v37 = vpop.f32.mrb[2].mxu0 }
 0x24d   :  { %v1776_v43 = vadd.f32 %v1237_v35, %v910_v37  ;;  %v1506_v47 = vpop.f32.mrb[3].mxu0 }
 0x24f   :  { %v1777_v48 = vadd.f32 %v1776_v43, %v1205_v2 }
 0x251   :  { %v1209_v51 = vmax.f32 %v1777_v48, 0.0 }
 0x253   :  { %v1217_v52 = vmul.f32 %v1238_v1, %v1209_v51 }
 0x255   :  { %1218 = vadd.xlane.f32.xlu0 %v1217_v52 }
 0x2e2   :  { %v1219_v54 = vpop.xlane.xlu0 %1218 }
 0x2e3   :  { %v1227_v59 = vadd.f32 %v1239_v53, %v1219_v54 }
 0x2e5   :  { %1229 = vst.msk [vmem:[%s2263_s7] sm:$0xff] %vm1228_vm3, %v1227_v59 }
 0x2e6   :  { %1234 = vsyncpa [#allocation4], 1 }
 0x2e7   :  { %1235 = vsyncpa [#allocation6], 1 }

</bundles_post_ra>
